<compile_context>
chip_gen: v7x
topology: tpu7x:2x2x1
jax: 0.10.0
libtpu: 0.0.40
codegen_flags: <defaults>
</compile_context>

<pallas_src>
import math
import functools

import jax
import jax.numpy as jnp
from jax.experimental import pallas as pl
from jax.experimental.pallas import tpu as pltpu


# lowbias32 mixing constants (golden ratio written as signed int32).
_GOLD_S32 = -1640531527          # 0x9e3779b9
_MIX1_U32 = 0x7FEB352D
_MIX2_U32 = 0x846CA68B


# ----------------------------------------------------------------------------
# Kernel
# ----------------------------------------------------------------------------
def _pos_enc_kernel(seed_ref, x_ref, div_ref, phase_ref, o_ref, *,
                    p: float, training: bool, batch: int):
    """One (block_rows, B*D_pad) tile: out = dropout(x + pe[row])."""
    i = pl.program_id(0)
    ts, bd = x_ref.shape                               # (block_rows, B*D_pad)
    d = div_ref.shape[-1]                              # D_pad

    # --- positional encoding: a single sin per (row, d), replicated over B ---
    # sin(pos*div + phase), phase = pi/2 on odd d  ==  interleaved sin/cos.
    rows = (jax.lax.broadcasted_iota(jnp.int32, (ts, d), 0)
            + i * ts).astype(jnp.float32)              # small (ts, D) convert
    pe_d = jnp.sin(rows * div_ref[...] + phase_ref[...])          # (ts, d)
    pe = pe_d if batch == 1 else jnp.concatenate([pe_d] * batch, axis=1)

    y = x_ref[...] + pe

    # --- dropout: stateless uint32 counter hash, integer keep threshold ------
    if training and p > 0.0:
        keep_prob = 1.0 - p
        g_rows = jax.lax.broadcasted_iota(jnp.int32, (ts, bd), 0) + i * ts
        lanes = jax.lax.broadcasted_iota(jnp.int32, (ts, bd), 1)
        idx = g_rows * bd + lanes                      # unique per element
        h = pltpu.bitcast(idx * jnp.int32(_GOLD_S32) + seed_ref[0], jnp.uint32)
        h = h ^ (h >> 16)
        h = h * jnp.uint32(_MIX1_U32)
        h = h ^ (h >> 15)
        h = h * jnp.uint32(_MIX2_U32)
        h = h ^ (h >> 16)
        thresh = jnp.uint32(int(round(keep_prob * (1 << 23))))
        keep = (h >> 9) < thresh                       # P(keep) = keep_prob
        y = jnp.where(keep, y * (1.0 / keep_prob), jnp.zeros_like(y))

    o_ref[...] = y.astype(o_ref.dtype)


# ----------------------------------------------------------------------------
# Wrapper
# ----------------------------------------------------------------------------
def positional_encoding_forward(x, *, p: float = 0.1, training: bool = True,
                                seed: int = 0, block_rows: int | None = None,
                                max_len: int = 5000):
    """x: (seq_len, batch, d_model) float32 -> same shape/dtype."""
    S, B, D = x.shape
    assert S <= max_len, "sequence longer than max_len"
    assert D % 2 == 0, "d_model must be even (as in the PyTorch module)"

    # Minimal D padding so that B*D_pad % 128 == 0 -> lane-dense (unmasked) vst.
    g = 128 // math.gcd(B, 128)
    D_pad = ((D + g - 1) // g) * g
    if D_pad != D:
        x = jnp.pad(x, ((0, 0), (0, 0), (0, D_pad - D)))
    BD = B * D_pad
    x2 = x.reshape(S, BD)                              # lane-dense slab

    # Tiny per-lane tables, (1, D_pad): div_term and the sin->cos phase shift.
    d_idx = jnp.arange(D)
    k = (d_idx // 2).astype(jnp.float32)
    div_d = jnp.exp(k * (-2.0 * math.log(10000.0) / D))
    phase_d = (d_idx % 2).astype(jnp.float32) * (math.pi / 2.0)
    if D_pad != D:
        div_d = jnp.pad(div_d, (0, D_pad - D))         # pe == 0 in pad region
        phase_d = jnp.pad(phase_d, (0, D_pad - D))
    div_b = div_d[None, :]
    phase_b = phase_d[None, :]

    if block_rows is None:
        # ~8 MiB f32 per block: with double-buffered in+out that is ~32 MiB,
        # safe under the 48 MiB scoped limit on all of v5e/v6e/v7x (64 MiB phys).
        max_elems = 2 * 1024 * 1024
        rows_cap = max(8, ((max_elems // max(BD, 1)) // 8) * 8)
        if S >= 16:
            # >= 2 grid steps so "parallel" can use both v7x TensorCores.
            half = max(8, ((pl.cdiv(S, 2) + 7) // 8) * 8)
            block_rows = min(rows_cap, half)
        else:
            block_rows = S
    assert block_rows == S or block_rows % 8 == 0, "block_rows must be *8 or S"

    grid = (pl.cdiv(S, block_rows),)
    seed_arr = jnp.array([seed], dtype=jnp.int32)
    kernel = functools.partial(_pos_enc_kernel, p=p, training=training, batch=B)

    out2 = pl.pallas_call(
        kernel,
        out_shape=jax.ShapeDtypeStruct((S, BD), x.dtype),
        grid_spec=pltpu.PrefetchScalarGridSpec(
            num_scalar_prefetch=1,                     # seed -> SMEM
            grid=grid,
            in_specs=[
                pl.BlockSpec((block_rows, BD), lambda i, seed: (i, 0)),
                pl.BlockSpec((1, D_pad), lambda i, seed: (0, 0)),
                pl.BlockSpec((1, D_pad), lambda i, seed: (0, 0)),
            ],
            out_specs=pl.BlockSpec((block_rows, BD), lambda i, seed: (i, 0)),
        ),
        compiler_params=pltpu.CompilerParams(
            dimension_semantics=("parallel",),         # 2 TCs on v7x
            vmem_limit_bytes=48 * 1024 * 1024),        # safe on all generations
        cost_estimate=pl.CostEstimate(
            flops=4 * S * BD,
            transcendentals=S * D_pad,                 # one sin per (row, d)
            bytes_accessed=2 * S * BD * 4),
    )(seed_arr, x2, div_b, phase_b)

    out = out2.reshape(S, B, D_pad)
    if D_pad != D:
        out = out[:, :, :D]
    return out


# ----------------------------------------------------------------------------
# Main
# ----------------------------------------------------------------------------
if __name__ == "__main__":
    seq_len, batch, d_model = 32, 2, 128               # B*D = 256 -> lane-dense
    dropout_p = 0.1
    block_rows = 8                                     # grid of 4 tiles

    key = jax.random.PRNGKey(0)
    x = jax.random.normal(key, (seq_len, batch, d_model), dtype=jnp.float32)

    # --- eval mode: dropout is identity -> compare against the reference ----
    out_eval = positional_encoding_forward(
        x, p=dropout_p, training=False, seed=0, block_rows=block_rows)
    jax.block_until_ready(out_eval)

    pos = jnp.arange(seq_len, dtype=jnp.float32)[:, None]
    div = jnp.exp(jnp.arange(0, d_model, 2, dtype=jnp.float32)
                  * (-math.log(10000.0) / d_model))
    pe = jnp.zeros((seq_len, 1, d_model), jnp.float32)
    pe = pe.at[:, 0, 0::2].set(jnp.sin(pos * div))
    pe = pe.at[:, 0, 1::2].set(jnp.cos(pos * div))
    ref = x + pe

    max_err = float(jnp.max(jnp.abs(out_eval - ref)))
    assert max_err < 5e-4, f"eval mismatch vs reference: {max_err}"

    # --- training mode: stochastic dropout ----------------------------------
    out_train = positional_encoding_forward(
        x, p=dropout_p, training=True, seed=1234, block_rows=block_rows)
    jax.block_until_ready(out_train)

    keep_prob = 1.0 - dropout_p
    dropped = out_train == 0.0                         # exact-zero x+pe is ~impossible
    zero_frac = float(jnp.mean(dropped))
    assert 0.03 < zero_frac < 0.20, f"dropout rate off: {zero_frac}"
    kept_err = jnp.where(~dropped, out_train - ref / keep_prob, 0.0)
    assert float(jnp.max(jnp.abs(kept_err))) < 1e-3, "kept values mis-scaled"
    assert out_train.shape == (seq_len, batch, d_model)
    assert out_train.dtype == jnp.float32

    print("KERNEL_OK")
</pallas_src>

<mosaic_0001>
module attributes {stable_mosaic.version = 11 : i64} {
  func.func @_pos_enc_kernel(%arg0: i32, %arg1: memref<1xi32, #tpu.memory_space<smem>>, %arg2: memref<8x256xf32, #tpu.memory_space<vmem>>, %arg3: memref<1x128xf32, #tpu.memory_space<vmem>>, %arg4: memref<1x128xf32, #tpu.memory_space<vmem>>, %arg5: memref<8x256xf32, #tpu.memory_space<vmem>>) attributes {dimension_semantics = [#tpu.dimension_semantics<parallel>], iteration_bounds = array<i64: 4>, scalar_prefetch = 1 : i64, scratch_operands = 0 : i64, tpu.core_type = #tpu.core_type<tc>, window_params = [{transform_indices = @transform_0, window_bounds = array<i64: 8, 256>}, {pipeline_mode = #tpu.pipeline_mode<synchronous>, transform_indices = @transform_1, window_bounds = array<i64: 1, 128>}, {pipeline_mode = #tpu.pipeline_mode<synchronous>, transform_indices = @transform_2, window_bounds = array<i64: 1, 128>}, {transform_indices = @transform_3, window_bounds = array<i64: 8, 256>}]} {
    %0 = tpu.iota {dimensions = array<i32: 0>} : vector<8x128xi32>
    %c8_i32 = arith.constant 8 : i32
    %1 = arith.muli %arg0, %c8_i32 : i32
    %2 = vector.broadcast %1 : i32 to vector<8x128xi32>
    %3 = arith.addi %0, %2 : vector<8x128xi32>
    %4 = arith.sitofp %3 : vector<8x128xi32> to vector<8x128xf32>
    %c0 = arith.constant 0 : index
    %c0_0 = arith.constant 0 : index
    %5 = vector.load %arg3[%c0, %c0_0] : memref<1x128xf32, #tpu.memory_space<vmem>>, vector<1x128xf32>
    %6 = vector.broadcast %5 : vector<1x128xf32> to vector<8x128xf32>
    %7 = arith.mulf %4, %6 : vector<8x128xf32>
    %c0_1 = arith.constant 0 : index
    %c0_2 = arith.constant 0 : index
    %8 = vector.load %arg4[%c0_1, %c0_2] : memref<1x128xf32, #tpu.memory_space<vmem>>, vector<1x128xf32>
    %9 = vector.broadcast %8 : vector<1x128xf32> to vector<8x128xf32>
    %10 = arith.addf %7, %9 : vector<8x128xf32>
    %11 = math.sin %10 : vector<8x128xf32>
    %12 = tpu.concatenate %11, %11 in 1 : vector<8x128xf32>, vector<8x128xf32> -> vector<8x256xf32>
    %c0_3 = arith.constant 0 : index
    %c0_4 = arith.constant 0 : index
    %13 = vector.load %arg2[%c0_3, %c0_4] : memref<8x256xf32, #tpu.memory_space<vmem>>, vector<8x256xf32>
    %14 = arith.addf %13, %12 : vector<8x256xf32>
    %c0_5 = arith.constant 0 : index
    %c0_6 = arith.constant 0 : index
    %15 = vector.load %arg5[%c0_5, %c0_6] : memref<8x256xf32, #tpu.memory_space<vmem>>, vector<8x256xf32>
    tpu.vector_store %arg5[%c0_5, %c0_6], %14 {strides = array<i32>} : memref<8x256xf32, #tpu.memory_space<vmem>>, vector<8x256xf32>,
    return
  }
  func.func @transform_0(%arg0: i32, %arg1: memref<1xi32, #tpu.memory_space<smem>>) -> (i32, i32) {
    %c0_i32 = arith.constant 0 : i32
    %c0_i32_0 = arith.constant 0 : i32
    return %arg0, %c0_i32 : i32, i32
  }
  func.func @transform_1(%arg0: i32, %arg1: memref<1xi32, #tpu.memory_space<smem>>) -> (i32, i32) {
    %c0_i32 = arith.constant 0 : i32
    %c0_i32_0 = arith.constant 0 : i32
    %c0_i32_1 = arith.constant 0 : i32
    return %c0_i32, %c0_i32_0 : i32, i32
  }
  func.func @transform_2(%arg0: i32, %arg1: memref<1xi32, #tpu.memory_space<smem>>) -> (i32, i32) {
    %c0_i32 = arith.constant 0 : i32
    %c0_i32_0 = arith.constant 0 : i32
    %c0_i32_1 = arith.constant 0 : i32
    return %c0_i32, %c0_i32_0 : i32, i32
  }
  func.func @transform_3(%arg0: i32, %arg1: memref<1xi32, #tpu.memory_space<smem>>) -> (i32, i32) {
    %c0_i32 = arith.constant 0 : i32
    %c0_i32_0 = arith.constant 0 : i32
    return %arg0, %c0_i32 : i32, i32
  }
}

</mosaic_0001>

<bundles_post_ra>
// kernel: tpu_custom_call.1
= control target key start
LH: loop header
LB: loop body
LE: loop exit
PB: predicated region body
PF: predicated region fallthrough
CT: control target
= control target key end

     0   :  { %10 = vsyncpa [#allocation5], 0  ;;  %s815_s0 = inlined_call_operand.<no memory space> [shape: s32[1], index: 0, kind: input, shape index: {}]   ;;  %s816_s1 = inlined_call_operand.hbm [shape: f32[32,256], index: 1, kind: input, shape index: {}]   ;;  %s817_s2 = inlined_call_operand.vmem [shape: f32[1,128], index: 2, kind: input, shape index: {}]   ;;  %s818_s3 = inlined_call_operand.vmem [shape: f32[1,128], index: 3, kind: input, shape index: {}]   ;;  %s819_s4 = inlined_call_operand.hbm [shape: f32[32,256], index: 4, kind: output, shape index: {}]  }
   0x1   :  { %12 = vsyncpa [#allocation5 + $0x1], 0 }
   0x2   :  { %13 = vsyncpa [#allocation6], 0 }
   0x3   :  { %15 = vsyncpa [#allocation6 + $0x1], 0  ;;  %s620_s15 = smov 0   ;;  %s622_s16 = smov 0  }
   0x4   :  { %s624_s0 = smov 0   ;;  %s626_s17 = smov 0  }
   0x5 LB: > { %s641_s18 = sadd.s32 4294967295, %s585_s17   ;;  %s406_s19 = sadd.s32 4294967294, %s585_s17   ;;  %s585_s17 = sphi %s626_s17, %s833_s17   ;;  %s581_s0 = sphi %s624_s0, %s832_s0   ;;  %s577_s16 = sphi %s622_s16, %s831_s16   ;;  %s573_s15 = sphi %s620_s15, %s830_s15  }
   0x6   : > { %s645_s20 = sadd.s32 1, %s585_s17   ;;  %s28_s21 = sadd.s32 1, %s581_s0 }
   0x7   : > { %s25_s22 = ssub.s32 %s585_s17, %s645_s20  ;;  %p35_p0 = scmp.ne.s32.totalorder %s581_s0, %s577_s16 }
   0x8   : > { %p26_p1 = scmp.eq.s32.totalorder %s25_s22, 0  ;;  %p36_p2 = scmp.eq.s32.totalorder %s585_s17, 0 }
   0x9   : > { %p41_p3 = scmp.ne.s32.totalorder %s577_s16, %s573_s15  ;;  %p42_p4 = scmp.eq.s32.totalorder %s641_s18, 0 }
   0xa   : > { %s657_s23 = scalar_select %p26_p1, %s581_s0, %s28_s21  }
   0xb   : > { %p659_p5 = por %p36_p2, %p35_p0  ;;  %p663_p6 = por %p42_p4, %p41_p3 }
   0xc   : > { %p107_p7 = scmp.eq.s32.totalorder %s641_s18, 3  ;;  %p113_p8 = scmp.eq.s32.totalorder %s406_s19, 3 }
   0xd   : > { %p445_p9 = scmp.lt.s32.totalorder %s585_s17, 4  ;;  %s139_s28 = sand.u32 1, %s581_s0  }
   0xe   : > { %p669_p10 = por %p107_p7, %p35_p0  ;;  %p673_p11 = por %p113_p8, %p41_p3 }
   0xf   : > { %s427_s29 = sshll.u32 %s585_s17, 8  ;;  %s409_s30 = sshll.u32 %s139_s28, 4 }
  0x10   : > { %s823_s26 = scalar_select %p669_p10, 1, 0 }
  0x11   : > { %s824_s27 = scalar_select %p673_p11, 1, 0 }
  0x12   : > { %s682_s7 = scalar_lea.hbm %s816_s1, %s427_s29  ;;  %s143_s8 = scalar_lea.vmem [#allocation4], %s409_s30 }
  0x13   : > { %s151_s9 = sshll.u32 %s143_s8, 4  ;;  %p686_p12 = pnand %p445_p9, %p659_p5  ;;  %s690_s9 = int_to_ptr.vmem [resolvable:$true] %s151_s9 }
  0x14   : > { %s140_s11 = scalar_lea.sflag [#allocation5], %s139_s28  ;;  %s489_s12 = scalar_lea.hbm %s682_s7, 256 }
  0x15   : > { %p490_p1 = scmp.ne.s32.totalorder %s682_s7, %s489_s12  ;;  %p491_p2 = pneg %p686_p12 }
  0x16   : > { %s494_s19 = scalar_lea.hbm %s816_s1, 1024  ;;  %p495_p5 = scmp.lt.u32.totalorder %s682_s7, %s816_s1 }
  0x17   : > { %p492_p3 = pnand %p491_p2, %p490_p1  ;;  %p496_p7 = scmp.lt.u32.totalorder %s494_s19, %s489_s12 }
  0x18   : > { %p498_p9 = scmp.lt.u32.totalorder %s489_s12, %s682_s7 }
  0x19   : > { %p493_p4 = pneg %p492_p3  ;;  %p497_p8 = por %p496_p7, %p495_p5 }
  0x1b   : > { %p499_p13 = por %p498_p9, %p497_p8 }
  0x1d   : > { %p500_p0 = pnand %p499_p13, %p493_p4 }
  0x1f   : > { %503 = shalt.err (!%p500_p0)
}
  0x20   : > { %s504_s24 = scalar_lea.vmem %s690_s9, 256  ;;  %s587_s28 = smov [#allocation4]  }
  0x21   : > { %p505_p1 = scmp.ne.s32.totalorder %s690_s9, %s504_s24  ;;  %s509_s29 = sshll.u32 %s587_s28, 4  ;;  %s510_s29 = int_to_ptr.vmem [resolvable:$false] %s509_s29 }
  0x22   : > { %s511_s30 = scalar_lea.vmem %s510_s29, 512  ;;  %p512_p10 = scmp.lt.s32.totalorder %s690_s9, %s510_s29 }
  0x23   : > { %p507_p3 = pnand %p505_p1, %p491_p2  ;;  %p513_p5 = scmp.lt.s32.totalorder %s511_s30, %s504_s24 }
  0x25   : > { %p508_p11 = pneg %p507_p3  ;;  %p514_p7 = por %p513_p5, %p512_p10 }
  0x27   : > { %p515_p8 = pnand %p514_p7, %p508_p11 }
  0x29   : > { %518 = shalt.err (!%p515_p8)
}
  0x2a   : > { %440 = dma.hbm_to_vmem [thread:$0]  (!%p686_p12), %s682_s7, 256, %s690_s9, %s140_s11  }
  0x2b   : > { %p826_p13 = scmp.lt.s32.totalorder %s585_s17, 5  ;;  %p827_p0 = scmp.ge.s32.totalorder %s585_s17, 1 }
  0x2d   : > { %p157_p2 = pnand %p827_p0, %p826_p13 }
  0x2e   : > { %s724_s5 = sand.u32 (!%p157_p2), 1, %s577_s16  }
  0x2f   : > { %160 = sbr.rel (%p157_p2) target bundleno = 163 (0xa3), region = 32  ;;  %s413_s6 = sshll.u32 (!%p157_p2), %s724_s5, 4 }
  0x30   : > { %s163_s8 = scalar_lea.sflag (!%p157_p2), [#allocation5], %s724_s5  ;;  %s730_s10 = scalar_lea.vmem (!%p157_p2), [#allocation4], %s413_s6 }
  0x36   : > { %564 = dma.done.wait (%p663_p6), %s163_s8, 256  }
  0x37   : > { %566 = vsyncadd (%p663_p6), %s163_s8, 4294967040  ;;  %v189_v0 = vlaneseq  ;;  %s415_s7 = sshll.u32 %s641_s18, 3  ;;  %v416_v5 = vld [vmem:[%s817_s2] ss:$0 sm:$0xff]  ;;  %v588_v20 = vmov 683565275  }
  0x38   : > { %v192_v1 = vstv %s415_s7  ;;  %v417_v6 = vld [vmem:[%s818_s3] ss:$0 sm:$0xff]  ;;  %v589_v22 = vmov 2475754826   ;;  %v590_v24 = vmov 2131351028  }
  0x39   : > { %v190_v2 = vshrl.u32 %v189_v0, 7  ;;  %v591_v26 = vmov 2102212464   ;;  %v592_v28 = vmov 920167782   ;;  %s188_s25 = scalar_lea.vmem [#allocation7], %s413_s6 }
  0x3a   : > { %v593_v35 = vmov 1326507024   ;;  %s336_s14 = sshll.u32 %s188_s25, 4  ;;  %s428_s19 = sshll.u32 %s641_s18, 8  ;;  %s769_s14 = int_to_ptr.vmem [resolvable:$true] %s336_s14 }
  0x3b   : > { %v193_v3 = vadd.s32 %v192_v1, %v190_v2  ;;  %s774_s24 = scalar_lea.hbm %s819_s4, %s428_s19  ;;  %s322_s28 = scalar_lea.sflag [#allocation6], %s724_s5 }
  0x3c   : > { %s519_s29 = scalar_lea.vmem %s769_s14, 256  ;;  %p828_p10 = scmp.ne.s32.totalorder %s823_s26, 0 }
  0x3d   : > { %v194_v4 = vcvt.s32.f32 %v193_v3  ;;  %p520_p6 = scmp.ne.s32.totalorder %s769_s14, %s519_s29  ;;  %s594_s18 = smov [#allocation7]  }
  0x3e   : > { %s523_s30 = sshll.u32 %s594_s18, 4  ;;  %s524_s30 = int_to_ptr.vmem [resolvable:$false] %s523_s30 }
  0x3f   : > { %v202_v7 = vmul.f32 %v416_v5, %v194_v4  ;;  %p521_p11 = pnand %p520_p6, %p828_p10  ;;  %s525_s6 = scalar_lea.vmem %s524_s30, 512 }
  0x40   : > { %p526_p4 = scmp.lt.s32.totalorder %s769_s14, %s524_s30  ;;  %p527_p9 = scmp.lt.s32.totalorder %s525_s6, %s519_s29 }
  0x41   : > { %v743_v8 = vadd.f32 %v417_v6, %v202_v7  ;;  %p522_p12 = pneg %p521_p11 }
  0x42   : > { %p528_p1 = por %p527_p9, %p526_p4 }
  0x43   : > { %v214_v9 = vand.u32 2139095040, %v743_v8  ;;  %v211_v11 = vand.u32 2147483647, %v743_v8  ;;  %vm213_vm7 = vcmp.lt.s32.totalorder %v743_v8, 0  ;;  %vm303_vm12 = vweird.f32 %v743_v8 }
  0x44   : > { %p529_p3 = pnand %p528_p1, %p522_p12 }
  0x45   : > { %v215_v10 = vshrl.u32 %v214_v9, 23  ;;  %v218_v14 = vand.u32 8388607, %v211_v11  ;;  %vm212_vm8 = vcmp.le.f32.partialorder %v211_v11, 0.7853982 }
  0x47   : > { %v418_v12 = vadd.s32 4294967169, %v215_v10  ;;  %v219_v17 = vor.u32 8388608, %v218_v14 }
  0x49   : > { %v221_v13 = vadd.s32 1, %v418_v12  ;;  %v259_v37 = vshll.u32 %v219_v17, 8 }
  0x4b   : > { %vm222_vm0 = vcmp.gt.s32.totalorder %v221_v13, 0 }
  0x4c   : > { %v223_v15 = vsel %vm222_vm0, %v221_v13, 0 }
  0x4d   : > { %v225_v16 = vand.u32 31, %v223_v15  ;;  %v224_v18 = vshrl.u32 %v223_v15, 5 }
  0x4f   : > { %v226_v19 = vsub.s32 32, %v225_v16  ;;  %v228_v21 = vshll.u32 %v588_v20, %v225_v16  ;;  %v231_v23 = vshll.u32 %v589_v22, %v225_v16  ;;  %v234_v25 = vshll.u32 %v590_v24, %v225_v16 }
  0x50   : > { %v237_v27 = vshll.u32 %v591_v26, %v225_v16  ;;  %v240_v29 = vshll.u32 %v592_v28, %v225_v16  ;;  %vm243_vm1 = vcmp.lt.s32.totalorder %v224_v18, 1  ;;  %vm246_vm2 = vcmp.lt.s32.totalorder %v224_v18, 4 }
  0x51   : > { %v227_v30 = vshrl.u32 %v588_v20, %v226_v19  ;;  %v229_v31 = vshrl.u32 %v589_v22, %v226_v19  ;;  %v232_v32 = vshrl.u32 %v590_v24, %v226_v19  ;;  %v235_v33 = vshrl.u32 %v591_v26, %v226_v19 }
  0x52   : > { %v238_v34 = vshrl.u32 %v592_v28, %v226_v19  ;;  %v241_v36 = vshrl.u32 %v593_v35, %v226_v19  ;;  %vm244_vm3 = vcmp.lt.s32.totalorder %v224_v18, 2  ;;  %vm245_vm4 = vcmp.lt.s32.totalorder %v224_v18, 3  ;;  %v315_v35 = vld [vmem:[%s730_s10] sm:$0xff] }
  0x53   : > { %v230_v38 = vor.u32 %v229_v31, %v228_v21  ;;  %v233_v39 = vor.u32 %v232_v32, %v231_v23  ;;  %v236_v40 = vor.u32 %v235_v33, %v234_v25 }
  0x54   : > { %v239_v41 = vor.u32 %v238_v34, %v237_v27  ;;  %v242_v42 = vor.u32 %v241_v36, %v240_v29  ;;  %v316_v36 = vld [vmem:[%s730_s10 + $0x8] sm:$0xff] }
  0x55   : > { %v247_v43 = vsel %vm243_vm1, %v227_v30, %v230_v38  ;;  %v248_v44 = vsel %vm246_vm2, %v236_v40, 2102212464  ;;  %v251_v45 = vsel %vm243_vm1, %v230_v38, %v233_v39  ;;  %v255_v46 = vsel %vm243_vm1, %v233_v39, %v236_v40 }
  0x56   : > { %v249_v47 = vsel %vm245_vm4, %v233_v39, %v248_v44  ;;  %v252_v48 = vsel %vm246_vm2, %v239_v41, 920167782  ;;  %v256_v49 = vsel %vm246_vm2, %v242_v42, 1326507024 }
  0x57   : > { %v253_v50 = vsel %vm245_vm4, %v236_v40, %v252_v48  ;;  %v257_v51 = vsel %vm245_vm4, %v239_v41, %v256_v49  ;;  %v250_v52 = vsel %vm244_vm3, %v247_v43, %v249_v47 }
  0x58   : > { %v254_v53 = vsel %vm244_vm3, %v251_v45, %v253_v50  ;;  %v258_v54 = vsel %vm244_vm3, %v255_v46, %v257_v51  ;;  %v266_v59 = vmul.u32 %v259_v37, %v250_v52 }
  0x59   : > { %v749_v55 = vmul.u32.u64.low %v259_v37, %v258_v54  ;;  %v750_v56 = vmul.u32.u64.high %v259_v37, %v258_v54, %v749_v55  ;;  %v752_v57 = vmul.u32.u64.low %v259_v37, %v254_v53  ;;  %v753_v58 = vmul.u32.u64.high %v259_v37, %v254_v53, %v752_v57 }
  0x5b   : > { %vm268_vm5 = vc.u32 %v750_v56, %v752_v57  ;;  %v269_v60 = vadd.s32 1, %v753_v58  ;;  %v267_v7 = vadd.s32 %v752_v57, %v750_v56 }
  0x5d   : > { %v270_v61 = vsel %vm268_vm5, %v269_v60, %v753_v58 }
  0x5e   : > { %v271_v62 = vadd.s32 %v270_v61, %v266_v59 }
  0x60   : > { %v272_v63 = vadd.s32 536870912, %v271_v62 }
  0x62   : > { %v273_v0 = vshrl.u32 %v272_v63, 30 }
  0x64   : > { %v274_v1 = vshll.u32 %v273_v0, 30  ;;  %v297_v21 = vsub.s32 4, %v273_v0 }
  0x66   : > { %v275_v2 = vsub.s32 %v271_v62, %v274_v1  ;;  %v298_v24 = vsel %vm213_vm7, %v297_v21, %v273_v0 }
  0x67   : > { %v300_v27 = vsel %vm212_vm8, 0, %v298_v24 }
  0x68   : > { %v277_v3 = vsub.s32 0, %v275_v2  ;;  %v304_v28 = vadd.s32 3, %v300_v27 }
  0x6a   : > { %v419_v4 = vmin.u32 %v277_v3, %v275_v2  ;;  %v305_v29 = vand.u32 3, %v304_v28 }
  0x6c   : > { %v279_v5 = vclz %v419_v4  ;;  %vm310_vm9 = vcmp.eq.s32.totalorder %v305_v29, 2  ;;  %vm307_vm10 = vcmp.eq.s32.totalorder %v305_v29, 0  ;;  %vm306_vm11 = vcmp.lt.s32.totalorder %v305_v29, 2 }
  0x6e   : > { %v420_v6 = vadd.s32 4294967294, %v279_v5 }
  0x70   : > { %vm421_vm6 = vcmp.lt.s32.totalorder %v420_v6, 0 }
  0x71   : > { %v282_v9 = vsel %vm421_vm6, 0, %v420_v6 }
  0x72   : > { %v283_v10 = vsub.s32 32, %v282_v9  ;;  %v284_v12 = vshll.u32 %v275_v2, %v282_v9  ;;  %v287_v13 = vsub.s32 4294967266, %v282_v9 }
  0x74   : > { %v285_v14 = vshrl.u32 %v267_v7, %v283_v10  ;;  %v288_v15 = vadd.s32 127, %v287_v13 }
  0x76   : > { %v286_v16 = vor.u32 %v285_v14, %v284_v12  ;;  %v289_v17 = vshll.u32 %v288_v15, 23 }
  0x78   : > { %v290_v18 = vor.u32 4788187, %v289_v17  ;;  %v293_v19 = vcvt.s32.f32 %v286_v16 }
  0x7a   : > { %v291_v20 = vand.u32 2147483647, %v290_v18 }
  0x7c   : > { %v294_v22 = vmul.f32 %v293_v19, %v291_v20 }
  0x7e   : > { %v295_v23 = vxor.u32 2147483648, %v294_v22 }
  0x80   : > { %v296_v25 = vsel %vm213_vm7, %v295_v23, %v294_v22 }
  0x81   : > { %v299_v26 = vsel %vm212_vm8, %v743_v8, %v296_v25 }
  0x82   : > { %485 = vcosq.f32 %v299_v26 }
  0x83   : > { %487 = vsinq.f32 %v299_v26 }
  0x8c   : > { %v486_v30 = vpop.eup %485 }
  0x8d   : > { %v488_v31 = vpop.eup %487  ;;  %v311_v32 = vxor.u32 2147483648, %v486_v30 }
  0x8e   : > { %v308_v11 = vxor.u32 2147483648, %v488_v31 }
  0x8f   : > { %v312_v33 = vsel %vm310_vm9, %v311_v32, %v488_v31 }
  0x90   : > { %v309_v34 = vsel %vm307_vm10, %v486_v30, %v308_v11 }
  0x91   : > { %v313_v37 = vsel %vm306_vm11, %v309_v34, %v312_v33 }
  0x92   : > { %v314_v38 = vsel %vm303_vm12, nan, %v313_v37 }
  0x93   : > { %v317_v39 = vadd.f32 %v315_v35, %v314_v38  ;;  %v318_v40 = vadd.f32 %v316_v36, %v314_v38 }
  0x95   : > { %319 = vst [vmem:[%s188_s25] sm:$0xff] %v317_v39  ;;  %320 = vst [vmem:[%s188_s25 + $0x8] sm:$0xff] %v318_v40 }
  0x96   : > { %532 = shalt.err (!%p529_p3)
}
  0x97   : > { %s533_s5 = scalar_lea.hbm %s774_s24, 256  ;;  %s537_s7 = scalar_lea.hbm %s819_s4, 1024 }
  0x98   : > { %p534_p5 = scmp.ne.s32.totalorder %s774_s24, %s533_s5  ;;  %p538_p13 = scmp.lt.u32.totalorder %s774_s24, %s819_s4 }
  0x99   : > { %p539_p0 = scmp.lt.u32.totalorder %s537_s7, %s533_s5  ;;  %p541_p6 = scmp.lt.u32.totalorder %s533_s5, %s774_s24 }
  0x9a   : > { %p535_p7 = pnand %p534_p5, %p828_p10 }
  0x9b   : > { %p540_p2 = por %p539_p0, %p538_p13 }
  0x9c   : > { %p536_p8 = pneg %p535_p7 }
  0x9d   : > { %p542_p11 = por %p541_p6, %p540_p2 }
  0x9f   : > { %p543_p12 = pnand %p542_p11, %p536_p8 }
  0xa1   : > { %546 = shalt.err (!%p543_p12)
}
  0xa2   : > { %435 = dma.vmem_to_hbm [thread:$0]  (%p828_p10), %s769_s14, 256, %s774_s24, %s322_s28  }
  0xa3 PF: > { %p446_p4 = scmp.ge.s32.totalorder %s585_s17, 2  ;;  %s348_s12 = sand.u32 1, %s573_s15  }
  0xa4   : > { %p829_p9 = scmp.ne.s32.totalorder %s824_s27, 0  ;;  %s349_s13 = scalar_lea.sflag [#allocation6], %s348_s12 }
  0xa6   : > { %p442_p1 = pnand %p446_p4, %p829_p9 }
  0xa8   : > { %568 = dma.done.wait (!%p442_p1), %s349_s13, 256  }
  0xa9   : > { %570 = vsyncadd (!%p442_p1), %s349_s13, 4294967040  ;;  %p18_p3 = scmp.ge.s32.totalorder %s645_s20, 6   ;;  %s830_s15 = smov %s577_s16 }
  0xaa   : > { %s831_s16 = smov %s581_s0  ;;  %s832_s0 = smov %s657_s23 }
  0xab   : > { %s833_s17 = smov %s645_s20  ;;  %20 = sbr.rel (!%p18_p3) target bundleno = 5 (0x5), region = 77 }
  0xb2   :  { %354 = vsyncpa [#allocation5], 1 }
  0xb3   :  { %356 = vsyncpa [#allocation5 + $0x1], 1 }
  0xb4   :  { %357 = vsyncpa [#allocation6], 1 }
  0xb5   :  { %359 = vsyncpa [#allocation6 + $0x1], 1 }

</bundles_post_ra>
